<compile_context>
chip_gen: v5e
topology: v5e:2x2
jax: 0.10.0
libtpu: 0.0.40
codegen_flags: <defaults>
</compile_context>

<pallas_src>
import jax
import jax.numpy as jnp
from jax.experimental import pallas as pl
from jax.experimental.pallas import tpu as pltpu


def _round_up(x, m):
    return (x + m - 1) // m * m


# ---------------------------------------------------------------------------
# Pallas kernel: full forward pass on one [features, bm] batch tile
# ---------------------------------------------------------------------------
def reschedule_mlp_kernel(x_ref,                     # [4,  bm]  (batch on lanes)
                          w1_ref, b1_ref,            # [16, 4], [16, 1]
                          w2_ref, b2_ref,            # [16, 16], [16, 1]
                          w3_ref, b3_ref,            # [8, 16], [8, 1]
                          w4t_ref, b4_ref,           # [8, 1],  [1, 1]
                          o_ref):                    # [1,  bm]
    x = x_ref[...]
    w1 = w1_ref[...]

    # fc1: K=4 contraction -> 4 broadcast-FMAs on the VPU
    # (an MXU pass here would be almost entirely padding).
    h = w1[:, 0:1] * x[0:1, :]
    for k in range(1, 4):
        h = h + w1[:, k:k + 1] * x[k:k + 1, :]
    h1 = jnp.maximum(h + b1_ref[...], 0.0)                       # [16, bm]

    # fc2 / fc3: dense-enough contractions -> MXU (batch on the lane axis).
    h2 = jnp.dot(w2_ref[...], h1,
                 preferred_element_type=jnp.float32) + b2_ref[...]
    h2 = jnp.maximum(h2, 0.0)                                    # [16, bm]
    h3 = jnp.dot(w3_ref[...], h2,
                 preferred_element_type=jnp.float32) + b3_ref[...]
    h3 = jnp.maximum(h3, 0.0)                                    # [8, bm]

    # fc4: single output feature -> VPU multiply + sublane reduce, then
    # clamp(min=0).  Result is a lane-dense [1, bm] row (unmasked store).
    y = jnp.sum(w4t_ref[...] * h3, axis=0, keepdims=True) + b4_ref[...]
    o_ref[...] = jnp.maximum(y, 0.0).astype(o_ref.dtype)


# ---------------------------------------------------------------------------
# Host wrapper
# ---------------------------------------------------------------------------
def reschedule_nn_forward(x, params, *, bm=None):
    """x: [B, input_size] float32  ->  [B, 1] float32."""
    B, in_size = x.shape
    (w1, b1), (w2, b2), (w3, b3), (w4, b4) = (
        params["fc1"], params["fc2"], params["fc3"], params["fc4"])
    out_size = w4.shape[0]            # PyTorch layout: weight is [out, in]
    w4t = w4.T                        # [8, 1] for the sublane reduce in fc4

    if bm is None:
        # Big enough to amortize the ~0.35us per-grid-step overhead, a multiple
        # of the 128-lane width, and (for large B) at least 2 grid steps so the
        # "parallel" axis can still be sharded across v7x's two TensorCores.
        bm = max(128, min(1024, _round_up(pl.cdiv(B, 2), 128)))
    assert bm % 128 == 0, "batch tile must be a multiple of the 128-lane width"

    Bp = _round_up(B, bm)
    xt = x.T                                            # [in_size, B]
    if Bp != B:
        xt = jnp.pad(xt, ((0, 0), (0, Bp - B)))         # zero tail, sliced off below

    def full_spec(shape):
        # Whole (tiny) array every step; constant block index -> DMA'd once.
        return pl.BlockSpec(shape, lambda i: (0,) * len(shape))

    grid = (Bp // bm,)
    out_t = pl.pallas_call(
        reschedule_mlp_kernel,
        out_shape=jax.ShapeDtypeStruct((out_size, Bp), jnp.float32),
        grid_spec=pltpu.PrefetchScalarGridSpec(
            num_scalar_prefetch=0,
            grid=grid,
            in_specs=[
                pl.BlockSpec((in_size, bm), lambda i: (0, i)),   # x tile
                full_spec(w1.shape), full_spec(b1.shape),
                full_spec(w2.shape), full_spec(b2.shape),
                full_spec(w3.shape), full_spec(b3.shape),
                full_spec(w4t.shape), full_spec(b4.shape),
            ],
            out_specs=pl.BlockSpec((out_size, bm), lambda i: (0, i)),
        ),
        compiler_params=pltpu.CompilerParams(
            dimension_semantics=("parallel",)),
    )(xt, w1, b1, w2, b2, w3, b3, w4t, b4)

    return out_t[:, :B].T                               # back to [B, 1]


# ---------------------------------------------------------------------------
# Deterministic parameter init (mimics nn.Linear's U(-1/sqrt(fan_in), ...)),
# kept in PyTorch's native [out, in] layout (bias as [out, 1]).
# ---------------------------------------------------------------------------
def init_params(key, sizes=(4, 16, 16, 8, 1)):
    params = {}
    names = ["fc1", "fc2", "fc3", "fc4"]
    for name, fan_in, fan_out in zip(names, sizes[:-1], sizes[1:]):
        key, kw, kb = jax.random.split(key, 3)
        bound = 1.0 / jnp.sqrt(fan_in)
        w = jax.random.uniform(kw, (fan_out, fan_in), jnp.float32, -bound, bound)
        b = jax.random.uniform(kb, (fan_out, 1), jnp.float32, -bound, bound)
        params[name] = (w, b)
    return params


def reference_forward(x, params):
    h = x
    for name in ["fc1", "fc2", "fc3"]:
        w, b = params[name]
        h = jnp.maximum(h @ w.T + b[:, 0], 0.0)
    w, b = params["fc4"]
    return jnp.maximum(h @ w.T + b[:, 0], 0.0)


if __name__ == "__main__":
    key = jax.random.PRNGKey(0)
    kp, kx = jax.random.split(key)

    params = init_params(kp)

    # B deliberately not a multiple of 128 to exercise host-side padding and
    # the 2-step grid (bm=256, padded batch 512).
    B, input_size = 300, 4
    x = jax.random.normal(kx, (B, input_size), dtype=jnp.float32)

    out = reschedule_nn_forward(x, params)
    out = jax.block_until_ready(out)

    ref = reference_forward(x, params)
    assert out.shape == (B, 1)
    assert jnp.allclose(out, ref, atol=1e-5, rtol=1e-5), "mismatch vs. JAX reference"

    print("KERNEL_OK")
</pallas_src>

<mosaic_0001>
module attributes {stable_mosaic.version = 11 : i64} {
  func.func @reschedule_mlp_kernel(%arg0: i32, %arg1: memref<4x256xf32, #tpu.memory_space<vmem>>, %arg2: memref<16x4xf32, #tpu.memory_space<vmem>>, %arg3: memref<16x1xf32, #tpu.memory_space<vmem>>, %arg4: memref<16x16xf32, #tpu.memory_space<vmem>>, %arg5: memref<16x1xf32, #tpu.memory_space<vmem>>, %arg6: memref<8x16xf32, #tpu.memory_space<vmem>>, %arg7: memref<8x1xf32, #tpu.memory_space<vmem>>, %arg8: memref<8x1xf32, #tpu.memory_space<vmem>>, %arg9: memref<1x1xf32, #tpu.memory_space<vmem>>, %arg10: memref<1x256xf32, #tpu.memory_space<vmem>>) attributes {dimension_semantics = [#tpu.dimension_semantics<parallel>], iteration_bounds = array<i64: 2>, scalar_prefetch = 0 : i64, scratch_operands = 0 : i64, tpu.core_type = #tpu.core_type<tc>, window_params = [{transform_indices = @transform_0, window_bounds = array<i64: 4, 256>}, {pipeline_mode = #tpu.pipeline_mode<synchronous>, transform_indices = @transform_1, window_bounds = array<i64: 16, 4>}, {pipeline_mode = #tpu.pipeline_mode<synchronous>, transform_indices = @transform_2, window_bounds = array<i64: 16, 1>}, {pipeline_mode = #tpu.pipeline_mode<synchronous>, transform_indices = @transform_3, window_bounds = array<i64: 16, 16>}, {pipeline_mode = #tpu.pipeline_mode<synchronous>, transform_indices = @transform_4, window_bounds = array<i64: 16, 1>}, {pipeline_mode = #tpu.pipeline_mode<synchronous>, transform_indices = @transform_5, window_bounds = array<i64: 8, 16>}, {pipeline_mode = #tpu.pipeline_mode<synchronous>, transform_indices = @transform_6, window_bounds = array<i64: 8, 1>}, {pipeline_mode = #tpu.pipeline_mode<synchronous>, transform_indices = @transform_7, window_bounds = array<i64: 8, 1>}, {pipeline_mode = #tpu.pipeline_mode<synchronous>, transform_indices = @transform_8, window_bounds = array<i64: 1, 1>}, {transform_indices = @transform_9, window_bounds = array<i64: 1, 256>}]} {
    %c0 = arith.constant 0 : index
    %c0_0 = arith.constant 0 : index
    %0 = vector.load %arg1[%c0, %c0_0] : memref<4x256xf32, #tpu.memory_space<vmem>>, vector<4x256xf32>
    %c0_1 = arith.constant 0 : index
    %c0_2 = arith.constant 0 : index
    %1 = vector.load %arg2[%c0_1, %c0_2] : memref<16x4xf32, #tpu.memory_space<vmem>>, vector<16x4xf32>
    %2 = vector.extract_strided_slice %1 {offsets = [0, 0], sizes = [16, 1], strides = [1, 1]} : vector<16x4xf32> to vector<16x1xf32>
    %3 = vector.extract_strided_slice %0 {offsets = [0, 0], sizes = [1, 256], strides = [1, 1]} : vector<4x256xf32> to vector<1x256xf32>
    %4 = vector.broadcast %2 : vector<16x1xf32> to vector<16x256xf32>
    %5 = vector.broadcast %3 : vector<1x256xf32> to vector<16x256xf32>
    %6 = arith.mulf %4, %5 : vector<16x256xf32>
    %7 = vector.extract_strided_slice %1 {offsets = [0, 1], sizes = [16, 1], strides = [1, 1]} : vector<16x4xf32> to vector<16x1xf32>
    %8 = vector.extract_strided_slice %0 {offsets = [1, 0], sizes = [1, 256], strides = [1, 1]} : vector<4x256xf32> to vector<1x256xf32>
    %9 = vector.broadcast %7 : vector<16x1xf32> to vector<16x256xf32>
    %10 = vector.broadcast %8 : vector<1x256xf32> to vector<16x256xf32>
    %11 = arith.mulf %9, %10 : vector<16x256xf32>
    %12 = arith.addf %6, %11 : vector<16x256xf32>
    %13 = vector.extract_strided_slice %1 {offsets = [0, 2], sizes = [16, 1], strides = [1, 1]} : vector<16x4xf32> to vector<16x1xf32>
    %14 = vector.extract_strided_slice %0 {offsets = [2, 0], sizes = [1, 256], strides = [1, 1]} : vector<4x256xf32> to vector<1x256xf32>
    %15 = vector.broadcast %13 : vector<16x1xf32> to vector<16x256xf32>
    %16 = vector.broadcast %14 : vector<1x256xf32> to vector<16x256xf32>
    %17 = arith.mulf %15, %16 : vector<16x256xf32>
    %18 = arith.addf %12, %17 : vector<16x256xf32>
    %19 = vector.extract_strided_slice %1 {offsets = [0, 3], sizes = [16, 1], strides = [1, 1]} : vector<16x4xf32> to vector<16x1xf32>
    %20 = vector.extract_strided_slice %0 {offsets = [3, 0], sizes = [1, 256], strides = [1, 1]} : vector<4x256xf32> to vector<1x256xf32>
    %21 = vector.broadcast %19 : vector<16x1xf32> to vector<16x256xf32>
    %22 = vector.broadcast %20 : vector<1x256xf32> to vector<16x256xf32>
    %23 = arith.mulf %21, %22 : vector<16x256xf32>
    %24 = arith.addf %18, %23 : vector<16x256xf32>
    %c0_3 = arith.constant 0 : index
    %c0_4 = arith.constant 0 : index
    %25 = vector.load %arg3[%c0_3, %c0_4] : memref<16x1xf32, #tpu.memory_space<vmem>>, vector<16x1xf32>
    %26 = vector.broadcast %25 : vector<16x1xf32> to vector<16x256xf32>
    %27 = arith.addf %24, %26 : vector<16x256xf32>
    %cst = arith.constant 0.000000e+00 : f32
    %28 = vector.broadcast %cst : f32 to vector<16x256xf32>
    %29 = arith.maximumf %27, %28 : vector<16x256xf32>
    %c0_5 = arith.constant 0 : index
    %c0_6 = arith.constant 0 : index
    %30 = vector.load %arg4[%c0_5, %c0_6] : memref<16x16xf32, #tpu.memory_space<vmem>>, vector<16x16xf32>
    %cst_7 = arith.constant dense<0.000000e+00> : vector<16x256xf32>
    %31 = tpu.matmul %30, %29, %cst_7 {dimension_numbers = #tpu.dot_dimension_numbers<[1], [0], [0], [1], [0, 0, 1, 1], [], []>} : vector<16x16xf32>, vector<16x256xf32>, vector<16x256xf32> -> vector<16x256xf32>
    %c0_8 = arith.constant 0 : index
    %c0_9 = arith.constant 0 : index
    %32 = vector.load %arg5[%c0_8, %c0_9] : memref<16x1xf32, #tpu.memory_space<vmem>>, vector<16x1xf32>
    %33 = vector.broadcast %32 : vector<16x1xf32> to vector<16x256xf32>
    %34 = arith.addf %31, %33 : vector<16x256xf32>
    %cst_10 = arith.constant 0.000000e+00 : f32
    %35 = vector.broadcast %cst_10 : f32 to vector<16x256xf32>
    %36 = arith.maximumf %34, %35 : vector<16x256xf32>
    %c0_11 = arith.constant 0 : index
    %c0_12 = arith.constant 0 : index
    %37 = vector.load %arg6[%c0_11, %c0_12] : memref<8x16xf32, #tpu.memory_space<vmem>>, vector<8x16xf32>
    %cst_13 = arith.constant dense<0.000000e+00> : vector<8x256xf32>
    %38 = tpu.matmul %37, %36, %cst_13 {dimension_numbers = #tpu.dot_dimension_numbers<[1], [0], [0], [1], [0, 0, 1, 1], [], []>} : vector<8x16xf32>, vector<16x256xf32>, vector<8x256xf32> -> vector<8x256xf32>
    %c0_14 = arith.constant 0 : index
    %c0_15 = arith.constant 0 : index
    %39 = vector.load %arg7[%c0_14, %c0_15] : memref<8x1xf32, #tpu.memory_space<vmem>>, vector<8x1xf32>
    %40 = vector.broadcast %39 : vector<8x1xf32> to vector<8x256xf32>
    %41 = arith.addf %38, %40 : vector<8x256xf32>
    %cst_16 = arith.constant 0.000000e+00 : f32
    %42 = vector.broadcast %cst_16 : f32 to vector<8x256xf32>
    %43 = arith.maximumf %41, %42 : vector<8x256xf32>
    %c0_17 = arith.constant 0 : index
    %c0_18 = arith.constant 0 : index
    %44 = vector.load %arg8[%c0_17, %c0_18] : memref<8x1xf32, #tpu.memory_space<vmem>>, vector<8x1xf32>
    %45 = vector.broadcast %44 : vector<8x1xf32> to vector<8x256xf32>
    %46 = arith.mulf %45, %43 : vector<8x256xf32>
    %cst_19 = arith.constant dense<0.000000e+00> : vector<256xf32>
    %47 = vector.multi_reduction <add>, %46, %cst_19 [0] : vector<8x256xf32> to vector<256xf32>
    %48 = vector.shape_cast %47 : vector<256xf32> to vector<1x256xf32>
    %c0_20 = arith.constant 0 : index
    %c0_21 = arith.constant 0 : index
    %49 = vector.load %arg9[%c0_20, %c0_21] : memref<1x1xf32, #tpu.memory_space<vmem>>, vector<1x1xf32>
    %50 = vector.broadcast %49 : vector<1x1xf32> to vector<1x256xf32>
    %51 = arith.addf %48, %50 : vector<1x256xf32>
    %cst_22 = arith.constant 0.000000e+00 : f32
    %52 = vector.broadcast %cst_22 : f32 to vector<1x256xf32>
    %53 = arith.maximumf %51, %52 : vector<1x256xf32>
    %c0_23 = arith.constant 0 : index
    %c0_24 = arith.constant 0 : index
    %54 = vector.load %arg10[%c0_23, %c0_24] : memref<1x256xf32, #tpu.memory_space<vmem>>, vector<1x256xf32>
    tpu.vector_store %arg10[%c0_23, %c0_24], %53 {strides = array<i32>} : memref<1x256xf32, #tpu.memory_space<vmem>>, vector<1x256xf32>,
    return
  }
  func.func @transform_0(%arg0: i32) -> (i32, i32) {
    %c0_i32 = arith.constant 0 : i32
    %c0_i32_0 = arith.constant 0 : i32
    return %c0_i32, %arg0 : i32, i32
  }
  func.func @transform_1(%arg0: i32) -> (i32, i32) {
    %c0_i32 = arith.constant 0 : i32
    %c0_i32_0 = arith.constant 0 : i32
    %c0_i32_1 = arith.constant 0 : i32
    return %c0_i32, %c0_i32_0 : i32, i32
  }
  func.func @transform_2(%arg0: i32) -> (i32, i32) {
    %c0_i32 = arith.constant 0 : i32
    %c0_i32_0 = arith.constant 0 : i32
    %c0_i32_1 = arith.constant 0 : i32
    return %c0_i32, %c0_i32_0 : i32, i32
  }
  func.func @transform_3(%arg0: i32) -> (i32, i32) {
    %c0_i32 = arith.constant 0 : i32
    %c0_i32_0 = arith.constant 0 : i32
    %c0_i32_1 = arith.constant 0 : i32
    return %c0_i32, %c0_i32_0 : i32, i32
  }
  func.func @transform_4(%arg0: i32) -> (i32, i32) {
    %c0_i32 = arith.constant 0 : i32
    %c0_i32_0 = arith.constant 0 : i32
    %c0_i32_1 = arith.constant 0 : i32
    return %c0_i32, %c0_i32_0 : i32, i32
  }
  func.func @transform_5(%arg0: i32) -> (i32, i32) {
    %c0_i32 = arith.constant 0 : i32
    %c0_i32_0 = arith.constant 0 : i32
    %c0_i32_1 = arith.constant 0 : i32
    return %c0_i32, %c0_i32_0 : i32, i32
  }
  func.func @transform_6(%arg0: i32) -> (i32, i32) {
    %c0_i32 = arith.constant 0 : i32
    %c0_i32_0 = arith.constant 0 : i32
    %c0_i32_1 = arith.constant 0 : i32
    return %c0_i32, %c0_i32_0 : i32, i32
  }
  func.func @transform_7(%arg0: i32) -> (i32, i32) {
    %c0_i32 = arith.constant 0 : i32
    %c0_i32_0 = arith.constant 0 : i32
    %c0_i32_1 = arith.constant 0 : i32
    return %c0_i32, %c0_i32_0 : i32, i32
  }
  func.func @transform_8(%arg0: i32) -> (i32, i32) {
    %c0_i32 = arith.constant 0 : i32
    %c0_i32_0 = arith.constant 0 : i32
    %c0_i32_1 = arith.constant 0 : i32
    return %c0_i32, %c0_i32_0 : i32, i32
  }
  func.func @transform_9(%arg0: i32) -> (i32, i32) {
    %c0_i32 = arith.constant 0 : i32
    %c0_i32_0 = arith.constant 0 : i32
    return %c0_i32, %arg0 : i32, i32
  }
}

</mosaic_0001>

<bundles_post_ra>
// kernel: tpu_custom_call.1
= control target key start
LH: loop header
LB: loop body
LE: loop exit
PB: predicated region body
PF: predicated region fallthrough
CT: control target
= control target key end

     0   :  { %s1003_s0 = inlined_call_operand.vmem [shape: f32[4,512], index: 0, kind: input, shape index: {}]   ;;  %s1004_s1 = inlined_call_operand.vmem [shape: f32[16,4], index: 1, kind: input, shape index: {}]   ;;  %s1005_s2 = inlined_call_operand.vmem [shape: f32[16,1], index: 2, kind: input, shape index: {}]   ;;  %s1006_s3 = inlined_call_operand.vmem [shape: f32[16,16], index: 3, kind: input, shape index: {}]   ;;  %s1007_s4 = inlined_call_operand.vmem [shape: f32[16,1], index: 4, kind: input, shape index: {}]   ;;  %s1008_s5 = inlined_call_operand.vmem [shape: f32[8,16], index: 5, kind: input, shape index: {}]   ;;  %s1009_s6 = inlined_call_operand.vmem [shape: f32[8,1], index: 6, kind: input, shape index: {}]   ;;  %s1010_s7 = inlined_call_operand.vmem [shape: f32[8,1], index: 7, kind: input, shape index: {}]   ;;  %s1011_s8 = inlined_call_operand.<no memory space> [shape: f32[1,1], index: 8, kind: input, shape index: {}]   ;;  %s1012_s9 = inlined_call_operand.hbm [shape: f32[1,512], index: 9, kind: output, shape index: {}]  }
   0x1   :  { %v14_v0 = vstv %s1011_s8 }
   0x2   :  { %15 = vst [vmem:[#allocation2] sm:$0x1] %v14_v0 }
   0x3   :  { %16 = vsyncpa [#allocation4], 0 }
   0x4   :  { %18 = vsyncpa [#allocation4 + $0x1], 0  ;;  %s876_s11 = smov 0   ;;  %s878_s12 = smov 0  }
   0x5   :  { %s880_s13 = smov 0   ;;  %s882_s14 = smov 0  }
   0x6 LB: > { %s685_s8 = sadd.s32 4294967295, %s817_s14   ;;  %s686_s15 = sadd.s32 4294967294, %s817_s14   ;;  %s817_s14 = sphi %s882_s14, %s1018_s14   ;;  %s813_s13 = sphi %s880_s13, %s1017_s13   ;;  %s809_s12 = sphi %s878_s12, %s1016_s12   ;;  %s805_s11 = sphi %s876_s11, %s1015_s11  }
   0x7   : > { %s899_s16 = sadd.s32 1, %s817_s14   ;;  %s225_s17 = sadd.s32 1, %s813_s13 }
   0x8   : > { %s222_s18 = ssub.s32 %s817_s14, %s899_s16  ;;  %p235_p0 = scmp.ne.s32.totalorder %s813_s13, %s809_s12 }
   0x9   : > { %p223_p1 = scmp.eq.s32.totalorder %s222_s18, 0  ;;  %p236_p2 = scmp.eq.s32.totalorder %s685_s8, 1 }
   0xa   : > { %p241_p3 = scmp.ne.s32.totalorder %s809_s12, %s805_s11  ;;  %p242_p4 = scmp.eq.s32.totalorder %s686_s15, 1 }
   0xb   : > { %s911_s19 = scalar_select %p223_p1, %s813_s13, %s225_s17  }
   0xc   : > { %p913_p5 = por %p236_p2, %p235_p0  ;;  %p917_p6 = por %p242_p4, %p241_p3 }
   0xd   : > { %p689_p7 = scmp.ge.s32.totalorder %s817_s14, 1  ;;  %p293_p8 = scmp.lt.s32.totalorder %s817_s14, 3 }
   0xf   : > { %p294_p9 = pnand %p689_p7, %p293_p8 }
  0x10   : > { %s943_s18 = sshll.u32 (!%p294_p9), %s685_s8, 1  ;;  %s326_s24 = sand.u32 (!%p294_p9), 1, %s809_s12  }
  0x11   : > { %297 = sbr.rel (%p294_p9) target bundleno = 472 (0x1d8), region = 56  ;;  %p330_p10 = scmp.lt.s32.totalorder (!%p294_p9), %s943_s18, 3 }
  0x12   : > { %s690_s25 = sshll.u32 (!%p294_p9), %s326_s24, 1  ;;  %s622_s27 = scalar_lea.hbm (!%p294_p9), %s1012_s9, %s943_s18 }
  0x13   : > { %s328_s28 = scalar_lea.vmem (!%p294_p9), [#allocation3], %s690_s25  ;;  %s626_s30 = sshll.u32 (!%p294_p9), %s622_s27, 4  ;;  %s627_s30 = int_to_ptr.hbm [resolvable:$true] %s626_s30 }
  0x14   : > { %s624_s29 = sshll.u32 (!%p294_p9), %s328_s28, 4  ;;  %s612_s10 = scalar_lea.sflag (!%p294_p9), [#allocation4], %s326_s24  ;;  %s625_s29 = int_to_ptr.vmem [resolvable:$true] %s624_s29 }
  0x15   : > { %s769_s15 = sshra.s32 (!%p294_p9), %s627_s30, 4  ;;  %s770_s15 = int_to_ptr.hbm [resolvable:$true] %s769_s15 }
  0x16   : > { %v338_v1 = vld [vmem:[%s1004_s1 + $0x8] sm:$0xff]  ;;  %v337_v2 = vld [vmem:[%s1004_s1] sm:$0xff]  ;;  %v819_v3 = vmov 1   ;;  %v820_v4 = vmov 0   ;;  %v821_v5 = vmov 2   ;;  %v822_v7 = vmov 3   ;;  %p776_p0 = scmp.lt.s32.totalorder %s770_s15, %s1012_s9 }
  0x17   : > { %746 = vset.pattern.permute.xlu0 %v819_v3  ;;  %748 = vset.pattern.permute.xlu1 %v820_v4  ;;  %v427_v6 = vld [vmem:[%s1005_s2 + $0x8] sm:$0xff]  ;;  %v569_v8 = vld [vmem:[%s1010_s7] sm:$0xff]  ;;  %s331_s22 = scalar_select %p330_p10, %s943_s18, 3  ;;  %vm460_vm0 = vcmask 130048   ;;  %vm603_vm1 = vcmask 1040384  }
  0x18   : > { %365 = vperm.xlu0 %746, %v338_v1   ;;  %341 = vperm.xlu1 %748, %v337_v2   ;;  %v426_v9 = vld [vmem:[%s1005_s2] sm:$0xff]  ;;  %v449_v33 = vld [vmem:[%s1007_s4 + $0x8] sm:$0xff]  ;;  %s771_s18 = scalar_lea.hbm %s770_s15, 2 }
  0x19   : > { %750 = vset.pattern.permute.xlu2 %v821_v5  ;;  %v448_v10 = vld [vmem:[%s1007_s4] sm:$0xff]  ;;  %s692_s23 = sshll.u32 %s331_s22, 2  ;;  %p772_p11 = scmp.ne.s32.totalorder %s770_s15, %s771_s18 }
  0x1a   : > { %387 = vperm.xlu2 %750, %v338_v1   ;;  %v589_v11 = vld [vmem:[#allocation2] sm:$0x1]  ;;  %s333_s26 = scalar_lea.vmem %s1003_s0, %s692_s23  ;;  %s775_s23 = scalar_lea.hbm %s1012_s9, 4 }
  0x1b   : > { %v336_v15 = vld [vmem:[%s333_s26] sm:$0xff]  ;;  %p773_p12 = pnand %p772_p11, %p913_p5  ;;  %p777_p1 = scmp.lt.s32.totalorder %s775_s23, %s771_s18 }
  0x1c   : > { %v368_v16 = vperm.slane %v336_v15, 1  ;;  %v369_v17 = vperm.slane %v336_v15, 5  ;;  %v350_v18 = vperm.slane %v336_v15, 0  ;;  %v351_v19 = vperm.slane %v336_v15, 4  ;;  %v518_v51 = vld [vmem:[%s1009_s6] sm:$0xff] }
  0x1d   : > { %v390_v23 = vperm.slane %v336_v15, 2  ;;  %v391_v24 = vperm.slane %v336_v15, 6  ;;  %v412_v36 = vperm.slane %v336_v15, 3  ;;  %v413_v37 = vperm.slane %v336_v15, 7  ;;  %p774_p13 = pneg %p773_p12  ;;  %p778_p2 = por %p777_p1, %p776_p0 }
  0x1e   : > { %v372_v20 = vperm.slane %v368_v16, 1  ;;  %v373_v21 = vperm.slane %v369_v17, 1  ;;  %v354_v25 = vperm.slane %v350_v18, 0  ;;  %v355_v26 = vperm.slane %v351_v19, 0 }
  0x1f   : > { %v394_v34 = vperm.slane %v390_v23, 2  ;;  %v395_v35 = vperm.slane %v391_v24, 2  ;;  %v416_v46 = vperm.slane %v412_v36, 3  ;;  %v417_v47 = vperm.slane %v413_v37, 3  ;;  %p779_p3 = pnand %p778_p2, %p774_p13 }
  0x20   : > { %747 = vset.pattern.permute.xlu0 %v820_v4  ;;  %749 = vset.pattern.permute.xlu1 %v819_v3 }
  0x21   : > { %346 = vperm.xlu0 %747, %v338_v1   ;;  %361 = vperm.xlu1 %749, %v337_v2  }
  0x22   : > { %383 = vperm.xlu2 %750, %v337_v2  }
  0x29   : > { %435 = vperm.xlu0 %747, %v427_v6   ;;  %751 = vset.pattern.permute.xlu1 %v822_v7 }
  0x2a   : > { %409 = vperm.xlu1 %751, %v338_v1   ;;  %752 = vset.pattern.permute.xlu2 %v822_v7 }
  0x2b   : > { %405 = vperm.xlu2 %752, %v337_v2  }
  0x31   : > { %572 = vperm.xlu0 %747, %v569_v8  }
  0x32   : > { %753 = vset.pattern.permute.xlu1 %v820_v4 }
  0x33   : > { %430 = vperm.xlu1 %753, %v426_v9   ;;  %754 = vset.pattern.permute.xlu2 %v820_v4 }
  0x34   : > { %457 = vperm.xlu2 %754, %v449_v33  }
  0x3b   : > { %452 = vperm.xlu1 %753, %v448_v10  }
  0x3c   : > { %521 = vperm.xlu2 %754, %v518_v51  }
  0x43   : > { %592 = vperm.xlu1 %753, %v589_v11  }
  0x74   : > { %v388_v12 = vpop.permute.xlu2 %387 }
  0x75   : > { %v398_v44 = vmul.f32 %v394_v34, %v388_v12  ;;  %v399_v45 = vmul.f32 %v395_v35, %v388_v12 }
  0x7c   : > { %v384_v22 = vpop.permute.xlu2 %383 }
  0x7d   : > { %v396_v57 = vmul.f32 %v394_v34, %v384_v22  ;;  %v397_v58 = vmul.f32 %v395_v35, %v384_v22 }
  0x85   : > { %v406_v52 = vpop.permute.xlu2 %405 }
  0x86   : > { %v418_v61 = vmul.f32 %v416_v46, %v406_v52  ;;  %v419_v62 = vmul.f32 %v417_v47, %v406_v52 }
  0x8a   : > { %v342_v13 = vpop.permute.xlu1 %341  ;;  %v366_v14 = vpop.permute.xlu0 %365 }
  0x8b   : > { %v376_v29 = vmul.f32 %v372_v20, %v366_v14  ;;  %v377_v30 = vmul.f32 %v373_v21, %v366_v14  ;;  %v356_v42 = vmul.f32 %v354_v25, %v342_v13  ;;  %v357_v43 = vmul.f32 %v355_v26, %v342_v13  ;;  %v446_v13 = vld [vmem:[%s1006_s3] sm:$0xff]  ;;  %v447_v14 = vld [vmem:[%s1006_s3 + $0x8] sm:$0xff] }
  0x8e   : > { %v458_v18 = vpop.permute.xlu2 %457 }
  0x93   : > { %v347_v27 = vpop.permute.xlu0 %346  ;;  %v362_v28 = vpop.permute.xlu1 %361 }
  0x94   : > { %v358_v31 = vmul.f32 %v354_v25, %v347_v27  ;;  %v359_v32 = vmul.f32 %v355_v26, %v347_v27  ;;  %v374_v38 = vmul.f32 %v372_v20, %v362_v28  ;;  %v375_v39 = vmul.f32 %v373_v21, %v362_v28 }
  0x96   : > { %v380_v40 = vadd.f32 %v376_v29, %v358_v31  ;;  %v381_v41 = vadd.f32 %v377_v30, %v359_v32  ;;  %v378_v48 = vadd.f32 %v374_v38, %v356_v42  ;;  %v379_v49 = vadd.f32 %v375_v39, %v357_v43  ;;  %v517_v29 = vld [vmem:[%s1008_s5] sm:$0xff]  ;;  %v522_v30 = vpop.permute.xlu2 %521 }
  0x98   : > { %v402_v55 = vadd.f32 %v398_v44, %v380_v40  ;;  %v403_v56 = vadd.f32 %v399_v45, %v381_v41  ;;  %v400_v0 = vadd.f32 %v396_v57, %v378_v48  ;;  %v401_v1 = vadd.f32 %v397_v58, %v379_v49 }
  0x9a   : > { %v422_v6 = vadd.f32 %v418_v61, %v400_v0  ;;  %v423_v7 = vadd.f32 %v419_v62, %v401_v1 }
  0x9b   : > { %v436_v63 = vpop.permute.xlu0 %435 }
  0x9c   : > { %v410_v50 = vpop.permute.xlu1 %409 }
  0x9d   : > { %v420_v53 = vmul.f32 %v416_v46, %v410_v50  ;;  %v421_v54 = vmul.f32 %v417_v47, %v410_v50 }
  0x9f   : > { %v424_v59 = vadd.f32 %v420_v53, %v402_v55  ;;  %v425_v60 = vadd.f32 %v421_v54, %v403_v56  ;;  %v606_v56 = vlaneseq }
  0xa1   : > { %v440_v2 = vadd.f32 %v436_v63, %v424_v59  ;;  %v441_v3 = vadd.f32 %v436_v63, %v425_v60  ;;  %vm608_vm2 = vcmp.lt.s32.totalorder %v606_v56, 256 }
  0xa3   : > { %v444_v4 = vmax.f32 %v440_v2, 0.0  ;;  %v445_v5 = vmax.f32 %v441_v3, 0.0  ;;  %v573_v37 = vpop.permute.xlu0 %572 }
  0xa5   : > { %v431_v8 = vpop.permute.xlu1 %430  ;;  %481 = vmatpush.msra.mxu0 %v444_v4  ;;  %504 = vmatpush.msra.mxu1 %v445_v5 }
  0xa6   : > { %v438_v9 = vadd.f32 %v431_v8, %v422_v6  ;;  %v439_v10 = vadd.f32 %v431_v8, %v423_v7 }
  0xa8   : > { %v442_v11 = vmax.f32 %v438_v9, 0.0  ;;  %v443_v12 = vmax.f32 %v439_v10, 0.0 }
  0xaa   : > { %482 = vmatpush.msra.mxu0 %v442_v11  ;;  %505 = vmatpush.msra.mxu1 %v443_v12 }
  0xab   : > { %693 = vmatmul.msk.f32.vlgmr.msra.gmra.mxu0 %vm460_vm0, %v446_v13  ;;  %695 = vmatmul.msk.f32.vlgmr.msra.gmra.mxu1 %vm460_vm0, %v446_v13 }
  0xad   : > { %v453_v17 = vpop.permute.xlu1 %452 }
  0xb3   : > { %694 = vmatmul.msk.f32.gmra.mxu0 %vm460_vm0, %v447_v14  ;;  %696 = vmatmul.msk.f32.gmra.mxu1 %vm460_vm0, %v447_v14 }
  0xb5   : > { %v593_v48 = vpop.permute.xlu1 %592 }
  0xb6   : > { %v595_v51 = vperm.slane %v593_v48, 0 }
 0x128   : > { %v484_v15 = vpop.f32.mrf.mxu0  ;;  %v507_v16 = vpop.f32.mrf.mxu1 }
 0x129   : > { %v485_v21 = vadd.f32 %v484_v15, %v453_v17  ;;  %v508_v22 = vadd.f32 %v507_v16, %v453_v17 }
 0x12b   : > { %v513_v27 = vmax.f32 %v485_v21, 0.0  ;;  %v514_v28 = vmax.f32 %v508_v22, 0.0 }
 0x130   : > { %v487_v19 = vpop.f32.mrf.mxu0  ;;  %v510_v20 = vpop.f32.mrf.mxu1 }
 0x131   : > { %v488_v23 = vadd.f32 %v487_v19, %v458_v18  ;;  %v511_v24 = vadd.f32 %v510_v20, %v458_v18 }
 0x133   : > { %v515_v25 = vmax.f32 %v488_v23, 0.0  ;;  %v516_v26 = vmax.f32 %v511_v24, 0.0 }
 0x135   : > { %541 = vmatpush.msra.mxu2 %v515_v25  ;;  %561 = vmatpush.msra.mxu3 %v516_v26 }
 0x137   : > { %542 = vmatpush.msra.mxu2 %v513_v27  ;;  %562 = vmatpush.msra.mxu3 %v514_v28 }
 0x138   : > { %697 = vmatmul.msk.f32.vlgmr.msra.gmra.mxu2 %vm460_vm0, %v517_v29  ;;  %698 = vmatmul.msk.f32.vlgmr.msra.gmra.mxu3 %vm460_vm0, %v517_v29 }
 0x1bb   : > { %v544_v31 = vpop.f32.mrf.mxu2  ;;  %v564_v32 = vpop.f32.mrf.mxu3 }
 0x1bc   : > { %v545_v33 = vadd.f32 %v544_v31, %v522_v30  ;;  %v565_v34 = vadd.f32 %v564_v32, %v522_v30 }
 0x1be   : > { %v567_v35 = vmax.f32 %v545_v33, 0.0  ;;  %v568_v36 = vmax.f32 %v565_v34, 0.0 }
 0x1c0   : > { %v575_v38 = vmul.f32 %v573_v37, %v567_v35  ;;  %v576_v39 = vmul.f32 %v573_v37, %v568_v36 }
 0x1c2   : > { %v577_v40 = vrot.slane %v575_v38, 4  ;;  %v583_v41 = vrot.slane %v576_v39, 4 }
 0x1c4   : > { %v578_v42 = vadd.f32 %v577_v40, %v575_v38  ;;  %v584_v43 = vadd.f32 %v583_v41, %v576_v39 }
 0x1c6   : > { %v579_v44 = vrot.slane %v578_v42, 2  ;;  %v585_v45 = vrot.slane %v584_v43, 2 }
 0x1c8   : > { %v580_v46 = vadd.f32 %v579_v44, %v578_v42  ;;  %v586_v47 = vadd.f32 %v585_v45, %v584_v43 }
 0x1ca   : > { %v581_v49 = vrot.slane %v580_v46, 1  ;;  %v587_v50 = vrot.slane %v586_v47, 1 }
 0x1cc   : > { %v582_v52 = vadd.f32 %v581_v49, %v580_v46  ;;  %v588_v53 = vadd.f32 %v587_v50, %v586_v47 }
 0x1ce   : > { %v597_v54 = vadd.f32 %v595_v51, %v588_v53  ;;  %v596_v55 = vadd.f32 %v595_v51, %v582_v52 }
 0x1d0   : > { %v599_v57 = vmax.f32 %v597_v54, 0.0  ;;  %v598_v58 = vmax.f32 %v596_v55, 0.0 }
 0x1d2   : > { %v602_v59 = vrot.slane %v599_v57, 7 }
 0x1d4   : > { %v604_v60 = vsel %vm603_vm1, %v598_v58, %v602_v59 }
 0x1d5   : > { %610 = vst.msk [vmem:[%s328_s28] sm:$0x3] %vm608_vm2, %v604_v60 }
 0x1d6   : > { %782 = shalt.err (!%p779_p3)
}
 0x1d7   : > { %703 = dma.vmem_to_hbm [thread:$0]  (%p913_p5), %s625_s29, 32, %s627_s30, %s612_s10  }
 0x1d8 PF: > { %p709_p4 = scmp.ge.s32.totalorder %s817_s14, 2  ;;  %s638_s24 = sand.u32 1, %s805_s11  }
 0x1d9   : > { %s639_s8 = scalar_lea.sflag [#allocation4], %s638_s24 }
 0x1da   : > { %p706_p7 = pnand %p709_p4, %p917_p6 }
 0x1dc   : > { %p707_p8 = pneg %p706_p7 }
 0x1de   : > { %800 = dma.done.wait (%p707_p8), %s639_s8, 32  }
 0x1df   : > { %802 = vsyncadd (%p707_p8), %s639_s8, 4294967264  ;;  %p21_p9 = scmp.ge.s32.totalorder %s899_s16, 4   ;;  %s1015_s11 = smov %s809_s12 }
 0x1e0   : > { %s1016_s12 = smov %s813_s13  ;;  %s1017_s13 = smov %s911_s19 }
 0x1e1   : > { %s1018_s14 = smov %s899_s16  ;;  %23 = sbr.rel (!%p21_p9) target bundleno = 6 (0x6), region = 91 }
 0x1e6   :  { %645 = vsyncpa [#allocation4], 1 }
 0x1e7   :  { %647 = vsyncpa [#allocation4 + $0x1], 1 }

</bundles_post_ra>
